<compile_context>
chip_gen: v7x
topology: tpu7x:2x2x1
jax: 0.10.0
libtpu: 0.0.40
codegen_flags: <defaults>
</compile_context>

<pallas_src>
import functools

import jax
import jax.numpy as jnp
import numpy as np
from jax.experimental import pallas as pl
from jax.experimental.pallas import tpu as pltpu


# ------------------------------- helpers ---------------------------------- #

def _round_up(v, m):
    return ((v + m - 1) // m) * m


def _pad_to(a, shape):
    return jnp.pad(a, [(0, t - s) for s, t in zip(a.shape, shape)])


# ----------------------------- Pallas kernel ------------------------------ #

def dvndta_kernel(x_ref, batch_ref,
                  wn_ref, bn_ref,
                  w1_ref, b1_ref,
                  w2_ref, b2_ref,
                  w3_ref, b3_ref,
                  wf_ref, bf_ref,
                  out_ref, pooled_acc):
    step = pl.program_id(0)
    b_pad = pooled_acc.shape[0]

    # ---- init pooled accumulator on the first node tile -------------------
    @pl.when(step == 0)
    def _init():
        pooled_acc[...] = jnp.zeros_like(pooled_acc)

    # ---- lin_node: Linear(node_dim, H) + SiLU on this node tile ------------
    # bf16 operands feed the MXU; accumulation + activation stay in f32.
    x = x_ref[...]                                          # [tile, node_dim] bf16
    h = jnp.dot(x, wn_ref[...],
                preferred_element_type=jnp.float32) + bn_ref[...]
    h = h * jax.nn.sigmoid(h)                               # SiLU, f32 [tile, H_pad]

    # TODO(synk): DVNHIL gconv1..gconv4 not provided -> identity here.

    # ---- global_add_pool: one-hot segment-sum matmul on the MXU -------------
    # Padded rows have batch id = -1, which never equals the (non-negative)
    # iota, so they contribute exactly zero.
    tile = h.shape[0]
    batch_ids = batch_ref[...]                              # [tile, 1] int32
    one_hot = (jax.lax.broadcasted_iota(jnp.int32, (tile, b_pad), 1)
               == batch_ids).astype(jnp.float32)            # [tile, b_pad]
    pooled_acc[...] += jax.lax.dot_general(
        one_hot, h,
        dimension_numbers=(((0,), (0,)), ((), ())),
        preferred_element_type=jnp.float32)                 # [b_pad, H_pad]

    # ---- FC head + output, only on the last grid step ----------------------
    @pl.when(step == pl.num_programs(0) - 1)
    def _finalize():
        # Dropout (eval) = identity.  BatchNorm1d (eval, mean=0/var=1, affine
        # identity) was folded wrapper-side into the *next* layer's weights,
        # so each block here is just Linear -> LeakyReLU.
        def fc_block(z, w_ref, b_ref):
            z = jnp.dot(z.astype(jnp.bfloat16), w_ref[...],
                        preferred_element_type=jnp.float32) + b_ref[...]
            return jnp.where(z > 0, z, 0.01 * z)            # LeakyReLU(0.01)

        h1 = fc_block(pooled_acc[...], w1_ref, b1_ref)
        h2 = fc_block(h1, w2_ref, b2_ref)
        h3 = fc_block(h2, w3_ref, b3_ref)

        # Final Linear(H, 1) as VPU multiply + lane reduce (avoids a 1-wide
        # MXU matmul); broadcast across 128 lanes -> unmasked lane-dense store.
        out_col = jnp.sum(h3 * wf_ref[...], axis=1, keepdims=True) + bf_ref[0]
        out_ref[...] = jnp.broadcast_to(out_col, out_ref.shape)


# --------------------------- parameter handling ---------------------------- #

def init_params(key, node_dim, hidden_dim):
    """Deterministic, PyTorch-Linear-style uniform init (f32, unpadded)."""
    def linear(key, fan_in, fan_out):
        kw, kb = jax.random.split(key)
        bound = 1.0 / jnp.sqrt(jnp.float32(fan_in))
        w = jax.random.uniform(kw, (fan_in, fan_out), jnp.float32, -bound, bound)
        b = jax.random.uniform(kb, (1, fan_out), jnp.float32, -bound, bound)
        return w, b

    keys = jax.random.split(key, 5)
    params = {}
    params["wn"], params["bn"] = linear(keys[0], node_dim, hidden_dim)
    params["w1"], params["b1"] = linear(keys[1], hidden_dim, hidden_dim)
    params["w2"], params["b2"] = linear(keys[2], hidden_dim, hidden_dim)
    params["w3"], params["b3"] = linear(keys[3], hidden_dim, hidden_dim)
    params["wf"], params["bf"] = linear(keys[4], hidden_dim, 1)
    return params


def prepare_params(params):
    """Pad weights to 128 lanes, fold eval-BatchNorm scale into the next
    Linear, and store matmul operands as bf16 (biases stay f32)."""
    node_dim, hidden = params["wn"].shape
    h_pad = _round_up(hidden, 128)
    inv_bn = (1.0 + 1e-5) ** -0.5   # BN1d eval: running mean=0, var=1, affine id
    # TODO(synk): for a trained model, fold its real running stats / gamma /
    # beta here instead of the fresh-init defaults.
    return {
        "wn": _pad_to(params["wn"], (node_dim, h_pad)).astype(jnp.bfloat16),
        "bn": _pad_to(params["bn"], (1, h_pad)).astype(jnp.float32),
        "w1": _pad_to(params["w1"], (h_pad, h_pad)).astype(jnp.bfloat16),
        "b1": _pad_to(params["b1"], (1, h_pad)).astype(jnp.float32),
        "w2": _pad_to(params["w2"] * inv_bn, (h_pad, h_pad)).astype(jnp.bfloat16),
        "b2": _pad_to(params["b2"], (1, h_pad)).astype(jnp.float32),
        "w3": _pad_to(params["w3"] * inv_bn, (h_pad, h_pad)).astype(jnp.bfloat16),
        "b3": _pad_to(params["b3"], (1, h_pad)).astype(jnp.float32),
        # final Linear(H, 1) kept as an f32 row vector (done on the VPU).
        "wf": _pad_to(params["wf"].T * inv_bn, (1, h_pad)).astype(jnp.float32),
        "bf": params["bf"].reshape(1).astype(jnp.float32),
    }


# ------------------------------ Python wrapper ----------------------------- #

@functools.partial(jax.jit, static_argnames=("n_graphs", "tile_n"))
def dvndta_forward(x, edge_index_intra, edge_index_inter, pos, edge_attr,
                   batch, prepped, *, n_graphs, tile_n=2048):
    # TODO(synk): edge indices / pos / edge_attr feed only DVNHIL (unavailable).
    del edge_index_intra, edge_index_inter, pos, edge_attr

    n_nodes, node_dim = x.shape
    h_pad = prepped["wn"].shape[1]
    b_pad = _round_up(max(n_graphs, 1), 8)

    # tile multiple of 32 -> satisfies bf16 (16) and int32 (8) sublane packing.
    tile_n = max(32, _round_up(tile_n, 32))
    tile = min(tile_n, _round_up(n_nodes, 32))
    n_pad = _round_up(n_nodes, tile)
    grid = (n_pad // tile,)

    # Streamed node features stored bf16 (halves the dominant HBM read).
    x_p = _pad_to(x, (n_pad, node_dim)).astype(jnp.bfloat16)
    # Padded rows carry batch id -1 -> never match any graph in the one-hot.
    batch_p = jnp.full((n_pad, 1), -1, jnp.int32).at[:n_nodes, 0].set(
        batch.astype(jnp.int32))

    full = lambda i: (0, 0)     # weights stay resident across the node grid

    out = pl.pallas_call(
        dvndta_kernel,
        out_shape=jax.ShapeDtypeStruct((b_pad, 128), jnp.float32),
        grid_spec=pltpu.PrefetchScalarGridSpec(
            num_scalar_prefetch=0,
            grid=grid,
            in_specs=[
                pl.BlockSpec((tile, node_dim), lambda i: (i, 0)),   # x tile (bf16)
                pl.BlockSpec((tile, 1), lambda i: (i, 0)),          # batch ids
                pl.BlockSpec((node_dim, h_pad), full),              # wn
                pl.BlockSpec((1, h_pad), full),                     # bn
                pl.BlockSpec((h_pad, h_pad), full),                 # w1
                pl.BlockSpec((1, h_pad), full),                     # b1
                pl.BlockSpec((h_pad, h_pad), full),                 # w2
                pl.BlockSpec((1, h_pad), full),                     # b2
                pl.BlockSpec((h_pad, h_pad), full),                 # w3
                pl.BlockSpec((1, h_pad), full),                     # b3
                pl.BlockSpec((1, h_pad), full),                     # wf (row)
                pl.BlockSpec(memory_space=pltpu.MemorySpace.SMEM),  # bf scalar
            ],
            out_specs=pl.BlockSpec((b_pad, 128), full),
            scratch_shapes=[pltpu.VMEM((b_pad, h_pad), jnp.float32)],
        ),
        compiler_params=pltpu.CompilerParams(
            # Node axis carries the pooled accumulator -> must be "arbitrary".
            dimension_semantics=("arbitrary",),
            vmem_limit_bytes=48 * 1024 * 1024,
        ),
    )(x_p, batch_p,
      prepped["wn"], prepped["bn"],
      prepped["w1"], prepped["b1"],
      prepped["w2"], prepped["b2"],
      prepped["w3"], prepped["b3"],
      prepped["wf"], prepped["bf"])

    return out[:n_graphs, 0]                               # x.view(-1)


# ------------------------------ pure-JAX ref -------------------------------- #

def dvndta_reference(x, batch, params, n_graphs):
    inv_bn = (1.0 + 1e-5) ** -0.5
    h = x @ params["wn"] + params["bn"]
    h = h * jax.nn.sigmoid(h)
    pooled = jnp.zeros((n_graphs, h.shape[1]), jnp.float32).at[batch].add(h)

    def block(z, w, b):
        z = z @ w + b
        z = jnp.where(z > 0, z, 0.01 * z)
        return z * inv_bn

    z = block(pooled, params["w1"], params["b1"])
    z = block(z, params["w2"], params["b2"])
    z = block(z, params["w3"], params["b3"])
    return (z @ params["wf"] + params["bf"]).reshape(-1)


# ---------------------------------- main ------------------------------------ #

if __name__ == "__main__":
    key = jax.random.PRNGKey(0)
    k_x, k_pos, k_ea, k_ei1, k_ei2, k_params = jax.random.split(key, 6)

    # Small synthetic graph batch: 2 graphs x 48 nodes each.
    n_nodes = 96
    node_dim = 8
    edge_dim = 4
    hidden_dim = 32
    n_graphs = 2
    e_intra = 24
    e_inter = 12

    x = jax.random.normal(k_x, (n_nodes, node_dim), jnp.float32)
    pos = jax.random.normal(k_pos, (n_nodes, 3), jnp.float32)
    edge_attr = jax.random.normal(k_ea, (e_intra, edge_dim), jnp.float32)
    edge_index_intra = jax.random.randint(k_ei1, (2, e_intra), 0, n_nodes, jnp.int32)
    edge_index_inter = jax.random.randint(k_ei2, (2, e_inter), 0, n_nodes, jnp.int32)
    batch = jnp.concatenate([jnp.zeros((48,), jnp.int32), jnp.ones((48,), jnp.int32)])

    params = init_params(k_params, node_dim, hidden_dim)
    prepped = prepare_params(params)
    ref = dvndta_reference(x, batch, params, n_graphs)

    # tile_n=32 forces a 3-step node grid to exercise the pooled accumulator.
    out_small = dvndta_forward(x, edge_index_intra, edge_index_inter, pos,
                               edge_attr, batch, prepped,
                               n_graphs=n_graphs, tile_n=32)
    jax.block_until_ready(out_small)
    assert out_small.shape == (n_graphs,)
    assert jnp.all(jnp.isfinite(out_small))
    np.testing.assert_allclose(np.asarray(out_small), np.asarray(ref),
                               rtol=5e-2, atol=5e-2)

    # Default (large-tile) path: single grid step here since n_nodes is tiny.
    out_big = dvndta_forward(x, edge_index_intra, edge_index_inter, pos,
                             edge_attr, batch, prepped, n_graphs=n_graphs)
    jax.block_until_ready(out_big)
    np.testing.assert_allclose(np.asarray(out_big), np.asarray(ref),
                               rtol=5e-2, atol=5e-2)

    print("KERNEL_OK")
</pallas_src>

<mosaic_0001>
module attributes {stable_mosaic.version = 11 : i64} {
  func.func @dvndta_kernel(%arg0: i32, %arg1: memref<32x8xbf16, #tpu.memory_space<vmem>>, %arg2: memref<32x1xi32, #tpu.memory_space<vmem>>, %arg3: memref<8x128xbf16, #tpu.memory_space<vmem>>, %arg4: memref<1x128xf32, #tpu.memory_space<vmem>>, %arg5: memref<128x128xbf16, #tpu.memory_space<vmem>>, %arg6: memref<1x128xf32, #tpu.memory_space<vmem>>, %arg7: memref<128x128xbf16, #tpu.memory_space<vmem>>, %arg8: memref<1x128xf32, #tpu.memory_space<vmem>>, %arg9: memref<128x128xbf16, #tpu.memory_space<vmem>>, %arg10: memref<1x128xf32, #tpu.memory_space<vmem>>, %arg11: memref<1x128xf32, #tpu.memory_space<vmem>>, %arg12: memref<1xf32, #tpu.memory_space<smem>>, %arg13: memref<8x128xf32, #tpu.memory_space<vmem>>, %arg14: memref<8x128xf32, #tpu.memory_space<vmem>>) attributes {dimension_semantics = [#tpu.dimension_semantics<arbitrary>], iteration_bounds = array<i64: 3>, scalar_prefetch = 0 : i64, scratch_operands = 1 : i64, tpu.core_type = #tpu.core_type<tc>, window_params = [{transform_indices = @transform_0, window_bounds = array<i64: 32, 8>}, {transform_indices = @transform_1, window_bounds = array<i64: 32, 1>}, {pipeline_mode = #tpu.pipeline_mode<synchronous>, transform_indices = @transform_2, window_bounds = array<i64: 8, 128>}, {pipeline_mode = #tpu.pipeline_mode<synchronous>, transform_indices = @transform_3, window_bounds = array<i64: 1, 128>}, {pipeline_mode = #tpu.pipeline_mode<synchronous>, transform_indices = @transform_4, window_bounds = array<i64: 128, 128>}, {pipeline_mode = #tpu.pipeline_mode<synchronous>, transform_indices = @transform_5, window_bounds = array<i64: 1, 128>}, {pipeline_mode = #tpu.pipeline_mode<synchronous>, transform_indices = @transform_6, window_bounds = array<i64: 128, 128>}, {pipeline_mode = #tpu.pipeline_mode<synchronous>, transform_indices = @transform_7, window_bounds = array<i64: 1, 128>}, {pipeline_mode = #tpu.pipeline_mode<synchronous>, transform_indices = @transform_8, window_bounds = array<i64: 128, 128>}, {pipeline_mode = #tpu.pipeline_mode<synchronous>, transform_indices = @transform_9, window_bounds = array<i64: 1, 128>}, {pipeline_mode = #tpu.pipeline_mode<synchronous>, transform_indices = @transform_10, window_bounds = array<i64: 1, 128>}, {transform_indices = @transform_11, window_bounds = array<i64: 1>}, {pipeline_mode = #tpu.pipeline_mode<synchronous>, transform_indices = @transform_12, window_bounds = array<i64: 8, 128>}]} {
    %c0_i32 = arith.constant 0 : i32
    %0 = arith.cmpi eq, %arg0, %c0_i32 : i32
    %1 = arith.extui %0 : i1 to i32
    %c0_i32_0 = arith.constant 0 : i32
    %2 = arith.cmpi ne, %1, %c0_i32_0 : i32
    scf.if %2 {
      %cst_15 = arith.constant 0.000000e+00 : f32
      %28 = vector.broadcast %cst_15 : f32 to vector<8x128xf32>
      %c0_16 = arith.constant 0 : index
      %c0_17 = arith.constant 0 : index
      %29 = vector.load %arg14[%c0_16, %c0_17] : memref<8x128xf32, #tpu.memory_space<vmem>>, vector<8x128xf32>
      tpu.vector_store %arg14[%c0_16, %c0_17], %28 {strides = array<i32>} : memref<8x128xf32, #tpu.memory_space<vmem>>, vector<8x128xf32>,
    } else {
    }
    %c0 = arith.constant 0 : index
    %c0_1 = arith.constant 0 : index
    %3 = vector.load %arg1[%c0, %c0_1] : memref<32x8xbf16, #tpu.memory_space<vmem>>, vector<32x8xbf16>
    %c0_2 = arith.constant 0 : index
    %c0_3 = arith.constant 0 : index
    %4 = vector.load %arg3[%c0_2, %c0_3] : memref<8x128xbf16, #tpu.memory_space<vmem>>, vector<8x128xbf16>
    %cst = arith.constant dense<0.000000e+00> : vector<32x128xf32>
    %5 = tpu.matmul %3, %4, %cst {dimension_numbers = #tpu.dot_dimension_numbers<[1], [0], [0], [1], [0, 0, 1, 1], [], []>} : vector<32x8xbf16>, vector<8x128xbf16>, vector<32x128xf32> -> vector<32x128xf32>
    %c0_4 = arith.constant 0 : index
    %c0_5 = arith.constant 0 : index
    %6 = vector.load %arg4[%c0_4, %c0_5] : memref<1x128xf32, #tpu.memory_space<vmem>>, vector<1x128xf32>
    %7 = vector.broadcast %6 : vector<1x128xf32> to vector<32x128xf32>
    %8 = arith.addf %5, %7 : vector<32x128xf32>
    %9 = arith.negf %8 : vector<32x128xf32>
    %10 = math.exp %9 : vector<32x128xf32>
    %cst_6 = arith.constant 1.000000e+00 : f32
    %11 = vector.broadcast %cst_6 : f32 to vector<32x128xf32>
    %12 = arith.addf %11, %10 : vector<32x128xf32>
    %13 = arith.divf %11, %12 : vector<32x128xf32>
    %14 = arith.mulf %8, %13 : vector<32x128xf32>
    %c0_7 = arith.constant 0 : index
    %c0_8 = arith.constant 0 : index
    %15 = vector.load %arg2[%c0_7, %c0_8] : memref<32x1xi32, #tpu.memory_space<vmem>>, vector<32x1xi32>
    %16 = tpu.iota {dimensions = array<i32: 1>} : vector<32x8xi32>
    %17 = vector.broadcast %15 : vector<32x1xi32> to vector<32x8xi32>
    %18 = arith.cmpi eq, %16, %17 : vector<32x8xi32>
    %19 = arith.extui %18 : vector<32x8xi1> to vector<32x8xi32>
    %20 = arith.sitofp %19 : vector<32x8xi32> to vector<32x8xf32>
    %c0_9 = arith.constant 0 : index
    %c0_10 = arith.constant 0 : index
    %21 = vector.load %arg14[%c0_9, %c0_10] : memref<8x128xf32, #tpu.memory_space<vmem>>, vector<8x128xf32>
    %cst_11 = arith.constant dense<0.000000e+00> : vector<8x128xf32>
    %22 = tpu.matmul %20, %14, %cst_11 {dimension_numbers = #tpu.dot_dimension_numbers<[0], [0], [1], [1], [0, 1, 1, 1], [], []>} : vector<32x8xf32>, vector<32x128xf32>, vector<8x128xf32> -> vector<8x128xf32>
    %23 = arith.addf %21, %22 : vector<8x128xf32>
    %c0_12 = arith.constant 0 : index
    %c0_13 = arith.constant 0 : index
    %24 = vector.load %arg14[%c0_12, %c0_13] : memref<8x128xf32, #tpu.memory_space<vmem>>, vector<8x128xf32>
    tpu.vector_store %arg14[%c0_12, %c0_13], %23 {strides = array<i32>} : memref<8x128xf32, #tpu.memory_space<vmem>>, vector<8x128xf32>,
    %c2_i32 = arith.constant 2 : i32
    %25 = arith.cmpi eq, %arg0, %c2_i32 : i32
    %26 = arith.extui %25 : i1 to i32
    %c0_i32_14 = arith.constant 0 : i32
    %27 = arith.cmpi ne, %26, %c0_i32_14 : i32
    scf.if %27 {
      %c0_15 = arith.constant 0 : index
      %c0_16 = arith.constant 0 : index
      %28 = vector.load %arg14[%c0_15, %c0_16] : memref<8x128xf32, #tpu.memory_space<vmem>>, vector<8x128xf32>
      %29 = arith.truncf %28 : vector<8x128xf32> to vector<8x128xbf16>
      %c0_17 = arith.constant 0 : index
      %c0_18 = arith.constant 0 : index
      %30 = vector.load %arg5[%c0_17, %c0_18] : memref<128x128xbf16, #tpu.memory_space<vmem>>, vector<128x128xbf16>
      %cst_19 = arith.constant dense<0.000000e+00> : vector<8x128xf32>
      %31 = tpu.matmul %29, %30, %cst_19 {dimension_numbers = #tpu.dot_dimension_numbers<[1], [0], [0], [1], [0, 0, 1, 1], [], []>} : vector<8x128xbf16>, vector<128x128xbf16>, vector<8x128xf32> -> vector<8x128xf32>
      %c0_20 = arith.constant 0 : index
      %c0_21 = arith.constant 0 : index
      %32 = vector.load %arg6[%c0_20, %c0_21] : memref<1x128xf32, #tpu.memory_space<vmem>>, vector<1x128xf32>
      %33 = vector.broadcast %32 : vector<1x128xf32> to vector<8x128xf32>
      %34 = arith.addf %31, %33 : vector<8x128xf32>
      %cst_22 = arith.constant 0.000000e+00 : f32
      %35 = vector.broadcast %cst_22 : f32 to vector<8x128xf32>
      %36 = arith.cmpf ogt, %34, %35 : vector<8x128xf32>
      %cst_23 = arith.constant 0.00999999977 : f32
      %37 = vector.broadcast %cst_23 : f32 to vector<8x128xf32>
      %38 = arith.mulf %37, %34 : vector<8x128xf32>
      %39 = arith.select %36, %34, %38 : vector<8x128xi1>, vector<8x128xf32>
      %40 = arith.truncf %39 : vector<8x128xf32> to vector<8x128xbf16>
      %c0_24 = arith.constant 0 : index
      %c0_25 = arith.constant 0 : index
      %41 = vector.load %arg7[%c0_24, %c0_25] : memref<128x128xbf16, #tpu.memory_space<vmem>>, vector<128x128xbf16>
      %cst_26 = arith.constant dense<0.000000e+00> : vector<8x128xf32>
      %42 = tpu.matmul %40, %41, %cst_26 {dimension_numbers = #tpu.dot_dimension_numbers<[1], [0], [0], [1], [0, 0, 1, 1], [], []>} : vector<8x128xbf16>, vector<128x128xbf16>, vector<8x128xf32> -> vector<8x128xf32>
      %c0_27 = arith.constant 0 : index
      %c0_28 = arith.constant 0 : index
      %43 = vector.load %arg8[%c0_27, %c0_28] : memref<1x128xf32, #tpu.memory_space<vmem>>, vector<1x128xf32>
      %44 = vector.broadcast %43 : vector<1x128xf32> to vector<8x128xf32>
      %45 = arith.addf %42, %44 : vector<8x128xf32>
      %cst_29 = arith.constant 0.000000e+00 : f32
      %46 = vector.broadcast %cst_29 : f32 to vector<8x128xf32>
      %47 = arith.cmpf ogt, %45, %46 : vector<8x128xf32>
      %cst_30 = arith.constant 0.00999999977 : f32
      %48 = vector.broadcast %cst_30 : f32 to vector<8x128xf32>
      %49 = arith.mulf %48, %45 : vector<8x128xf32>
      %50 = arith.select %47, %45, %49 : vector<8x128xi1>, vector<8x128xf32>
      %51 = arith.truncf %50 : vector<8x128xf32> to vector<8x128xbf16>
      %c0_31 = arith.constant 0 : index
      %c0_32 = arith.constant 0 : index
      %52 = vector.load %arg9[%c0_31, %c0_32] : memref<128x128xbf16, #tpu.memory_space<vmem>>, vector<128x128xbf16>
      %cst_33 = arith.constant dense<0.000000e+00> : vector<8x128xf32>
      %53 = tpu.matmul %51, %52, %cst_33 {dimension_numbers = #tpu.dot_dimension_numbers<[1], [0], [0], [1], [0, 0, 1, 1], [], []>} : vector<8x128xbf16>, vector<128x128xbf16>, vector<8x128xf32> -> vector<8x128xf32>
      %c0_34 = arith.constant 0 : index
      %c0_35 = arith.constant 0 : index
      %54 = vector.load %arg10[%c0_34, %c0_35] : memref<1x128xf32, #tpu.memory_space<vmem>>, vector<1x128xf32>
      %55 = vector.broadcast %54 : vector<1x128xf32> to vector<8x128xf32>
      %56 = arith.addf %53, %55 : vector<8x128xf32>
      %cst_36 = arith.constant 0.000000e+00 : f32
      %57 = vector.broadcast %cst_36 : f32 to vector<8x128xf32>
      %58 = arith.cmpf ogt, %56, %57 : vector<8x128xf32>
      %cst_37 = arith.constant 0.00999999977 : f32
      %59 = vector.broadcast %cst_37 : f32 to vector<8x128xf32>
      %60 = arith.mulf %59, %56 : vector<8x128xf32>
      %61 = arith.select %58, %56, %60 : vector<8x128xi1>, vector<8x128xf32>
      %c0_38 = arith.constant 0 : index
      %c0_39 = arith.constant 0 : index
      %62 = vector.load %arg11[%c0_38, %c0_39] : memref<1x128xf32, #tpu.memory_space<vmem>>, vector<1x128xf32>
      %63 = vector.broadcast %62 : vector<1x128xf32> to vector<8x128xf32>
      %64 = arith.mulf %61, %63 : vector<8x128xf32>
      %cst_40 = arith.constant dense<0.000000e+00> : vector<8xf32>
      %65 = vector.multi_reduction <add>, %64, %cst_40 [1] : vector<8x128xf32> to vector<8xf32>
      %66 = vector.shape_cast %65 : vector<8xf32> to vector<8x1xf32>
      %c0_41 = arith.constant 0 : index
      %67 = memref.load %arg12[%c0_41] : memref<1xf32, #tpu.memory_space<smem>>
      %68 = vector.broadcast %67 : f32 to vector<8x1xf32>
      %69 = arith.addf %66, %68 : vector<8x1xf32>
      %70 = vector.shape_cast %69 : vector<8x1xf32> to vector<8x1xf32>
      %71 = vector.broadcast %70 : vector<8x1xf32> to vector<8x128xf32>
      %c0_42 = arith.constant 0 : index
      %c0_43 = arith.constant 0 : index
      %72 = vector.load %arg13[%c0_42, %c0_43] : memref<8x128xf32, #tpu.memory_space<vmem>>, vector<8x128xf32>
      tpu.vector_store %arg13[%c0_42, %c0_43], %71 {strides = array<i32>} : memref<8x128xf32, #tpu.memory_space<vmem>>, vector<8x128xf32>,
    } else {
    }
    return
  }
  func.func @transform_0(%arg0: i32) -> (i32, i32) {
    %c0_i32 = arith.constant 0 : i32
    %c0_i32_0 = arith.constant 0 : i32
    return %arg0, %c0_i32 : i32, i32
  }
  func.func @transform_1(%arg0: i32) -> (i32, i32) {
    %c0_i32 = arith.constant 0 : i32
    %c0_i32_0 = arith.constant 0 : i32
    return %arg0, %c0_i32 : i32, i32
  }
  func.func @transform_2(%arg0: i32) -> (i32, i32) {
    %c0_i32 = arith.constant 0 : i32
    %c0_i32_0 = arith.constant 0 : i32
    %c0_i32_1 = arith.constant 0 : i32
    return %c0_i32, %c0_i32_0 : i32, i32
  }
  func.func @transform_3(%arg0: i32) -> (i32, i32) {
    %c0_i32 = arith.constant 0 : i32
    %c0_i32_0 = arith.constant 0 : i32
    %c0_i32_1 = arith.constant 0 : i32
    return %c0_i32, %c0_i32_0 : i32, i32
  }
  func.func @transform_4(%arg0: i32) -> (i32, i32) {
    %c0_i32 = arith.constant 0 : i32
    %c0_i32_0 = arith.constant 0 : i32
    %c0_i32_1 = arith.constant 0 : i32
    return %c0_i32, %c0_i32_0 : i32, i32
  }
  func.func @transform_5(%arg0: i32) -> (i32, i32) {
    %c0_i32 = arith.constant 0 : i32
    %c0_i32_0 = arith.constant 0 : i32
    %c0_i32_1 = arith.constant 0 : i32
    return %c0_i32, %c0_i32_0 : i32, i32
  }
  func.func @transform_6(%arg0: i32) -> (i32, i32) {
    %c0_i32 = arith.constant 0 : i32
    %c0_i32_0 = arith.constant 0 : i32
    %c0_i32_1 = arith.constant 0 : i32
    return %c0_i32, %c0_i32_0 : i32, i32
  }
  func.func @transform_7(%arg0: i32) -> (i32, i32) {
    %c0_i32 = arith.constant 0 : i32
    %c0_i32_0 = arith.constant 0 : i32
    %c0_i32_1 = arith.constant 0 : i32
    return %c0_i32, %c0_i32_0 : i32, i32
  }
  func.func @transform_8(%arg0: i32) -> (i32, i32) {
    %c0_i32 = arith.constant 0 : i32
    %c0_i32_0 = arith.constant 0 : i32
    %c0_i32_1 = arith.constant 0 : i32
    return %c0_i32, %c0_i32_0 : i32, i32
  }
  func.func @transform_9(%arg0: i32) -> (i32, i32) {
    %c0_i32 = arith.constant 0 : i32
    %c0_i32_0 = arith.constant 0 : i32
    %c0_i32_1 = arith.constant 0 : i32
    return %c0_i32, %c0_i32_0 : i32, i32
  }
  func.func @transform_10(%arg0: i32) -> (i32, i32) {
    %c0_i32 = arith.constant 0 : i32
    %c0_i32_0 = arith.constant 0 : i32
    %c0_i32_1 = arith.constant 0 : i32
    return %c0_i32, %c0_i32_0 : i32, i32
  }
  func.func @transform_11(%arg0: i32) -> i32 {
    %c0_i32 = arith.constant 0 : i32
    %c0_i32_0 = arith.constant 0 : i32
    return %c0_i32 : i32
  }
  func.func @transform_12(%arg0: i32) -> (i32, i32) {
    %c0_i32 = arith.constant 0 : i32
    %c0_i32_0 = arith.constant 0 : i32
    %c0_i32_1 = arith.constant 0 : i32
    return %c0_i32, %c0_i32_0 : i32, i32
  }
}

</mosaic_0001>

<bundles_post_ra>
// kernel: dvndta_forward.1
= control target key start
LH: loop header
LB: loop body
LE: loop exit
PB: predicated region body
PF: predicated region fallthrough
CT: control target
= control target key end

     0   :  { %s1836_s0 = inlined_call_operand.vmem [shape: bf16[96,8], index: 0, kind: input, shape index: {}]   ;;  %s1837_s1 = inlined_call_operand.vmem [shape: s32[96,1], index: 1, kind: input, shape index: {}]   ;;  %s1838_s2 = inlined_call_operand.vmem [shape: bf16[8,128], index: 2, kind: input, shape index: {}]   ;;  %s1839_s3 = inlined_call_operand.vmem [shape: f32[1,128], index: 3, kind: input, shape index: {}]   ;;  %s1840_s4 = inlined_call_operand.vmem [shape: bf16[128,128], index: 4, kind: input, shape index: {}]   ;;  %s1841_s5 = inlined_call_operand.hbm [shape: f32[1,128], index: 5, kind: input, shape index: {}]   ;;  %s1842_s6 = inlined_call_operand.vmem [shape: bf16[128,128], index: 6, kind: input, shape index: {}]   ;;  %s1843_s7 = inlined_call_operand.hbm [shape: f32[1,128], index: 7, kind: input, shape index: {}]   ;;  %s1844_s8 = inlined_call_operand.vmem [shape: bf16[128,128], index: 8, kind: input, shape index: {}]   ;;  %s1845_s9 = inlined_call_operand.hbm [shape: f32[1,128], index: 9, kind: input, shape index: {}]   ;;  %s1846_s10 = inlined_call_operand.vmem [shape: f32[1,128], index: 10, kind: input, shape index: {}]   ;;  %s1847_s11 = inlined_call_operand.<no memory space> [shape: f32[1], index: 11, kind: input, shape index: {}]   ;;  %s1848_s12 = inlined_call_operand.vmem [shape: f32[8,128], index: 12, kind: output, shape index: {}]  }
   0x1   :  { %17 = sst [smem:[#allocation3]] %s1847_s11 }
   0x2   :  { %18 = vsyncpa [#allocation5], 0 }
   0x3   :  { %19 = vsyncpa [#allocation7], 0  ;;  %s1599_s23 = smov 0  }
   0x4 LB: > { %s1605_s24 = sadd.s32 4294967295, %s1519_s23   ;;  %p1153_p0 = scmp.ge.s32.totalorder %s1519_s23, 1  ;;  %s1519_s23 = sphi %s1599_s23, %s25_s23  }
   0x5   : > { %p313_p1 = scmp.lt.s32.totalorder %s1519_s23, 4  ;;  %p1849_p3 = scmp.eq.s32.totalorder %s1605_s24, 0 }
   0x6   : > { %s1521_s25 = smov [#allocation6]   ;;  %s1522_s27 = smov [#allocation4]  }
   0x7   : > { %p1611_p4 = pnand %p1153_p0, %p313_p1  ;;  %s349_s26 = sshll.u32 %s1521_s25, 4  ;;  %s350_s26 = int_to_ptr.vmem [resolvable:$true] %s349_s26 }
   0x8   : > { %s335_s28 = sshll.u32 %s1522_s27, 4  ;;  %s1523_s29 = smov [#allocation8]   ;;  %s1623_s28 = int_to_ptr.vmem [resolvable:$true] %s335_s28 }
   0x9   : > { %s1851_s11 = scalar_select %p1611_p4, 1, 0 }
   0xa   : > { %p1343_p5 = pneg %p1611_p4  ;;  %s363_s30 = sshll.u32 %s1523_s29, 4  ;;  %s1625_s30 = int_to_ptr.vmem [resolvable:$true] %s363_s30 }
   0xb   : > { %s1421_s16 = scalar_lea.hbm %s1843_s7, 16 }
   0xc   : > { %p1619_p6 = pnand %p1849_p3, %p1343_p5  ;;  %p1422_p7 = scmp.ne.s32.totalorder %s1843_s7, %s1421_s16 }
   0xd   : > { %p1428_p11 = scmp.lt.u32.totalorder %s1421_s16, %s1843_s7 }
   0xe   : > { %p1635_p8 = pneg %p1619_p6 }
  0x10   : > { %p1424_p9 = pnand %p1635_p8, %p1422_p7 }
  0x12   : > { %p1425_p10 = pneg %p1424_p9 }
  0x14   : > { %p1430_p12 = pnand %p1428_p11, %p1425_p10 }
  0x16   : > { %1433 = shalt.err (!%p1430_p12)
}
  0x17   : > { %s1434_s22 = scalar_lea.vmem %s350_s26, 16  ;;  %s1441_s25 = scalar_lea.vmem %s350_s26, 32 }
  0x18   : > { %p1435_p13 = scmp.ne.s32.totalorder %s350_s26, %s1434_s22  ;;  %p1442_p5 = scmp.lt.s32.totalorder %s350_s26, %s350_s26 }
  0x19   : > { %p1443_p2 = scmp.lt.s32.totalorder %s1441_s25, %s1434_s22 }
  0x1a   : > { %p1437_p0 = pnand %p1435_p13, %p1635_p8 }
  0x1b   : > { %p1444_p3 = por %p1443_p2, %p1442_p5 }
  0x1c   : > { %p1438_p1 = pneg %p1437_p0 }
  0x1e   : > { %p1445_p4 = pnand %p1444_p3, %p1438_p1 }
  0x20   : > { %1448 = shalt.err (!%p1445_p4)
}
  0x21   : > { %1349 = dma.hbm_to_vmem [thread:$0]  (!%p1619_p6), %s1843_s7, 16, %s350_s26, [#allocation7]  }
  0x22   : > { %s1449_s16 = scalar_lea.hbm %s1841_s5, 16 }
  0x23   : > { %p1450_p7 = scmp.ne.s32.totalorder %s1841_s5, %s1449_s16  ;;  %p1456_p3 = scmp.lt.u32.totalorder %s1449_s16, %s1841_s5 }
  0x25   : > { %p1452_p9 = pnand %p1450_p7, %p1635_p8 }
  0x27   : > { %p1453_p2 = pneg %p1452_p9 }
  0x29   : > { %p1458_p4 = pnand %p1456_p3, %p1453_p2 }
  0x2b   : > { %1461 = shalt.err (!%p1458_p4)
}
  0x2c   : > { %s1462_s26 = scalar_lea.vmem %s1623_s28, 16  ;;  %s1469_s22 = scalar_lea.vmem %s1623_s28, 32 }
  0x2d   : > { %p1463_p10 = scmp.ne.s32.totalorder %s1623_s28, %s1462_s26  ;;  %p1470_p13 = scmp.lt.s32.totalorder %s1623_s28, %s1623_s28 }
  0x2e   : > { %p1471_p0 = scmp.lt.s32.totalorder %s1469_s22, %s1462_s26 }
  0x2f   : > { %p1465_p11 = pnand %p1463_p10, %p1635_p8 }
  0x30   : > { %p1472_p1 = por %p1471_p0, %p1470_p13 }
  0x31   : > { %p1466_p12 = pneg %p1465_p11 }
  0x33   : > { %p1473_p5 = pnand %p1472_p1, %p1466_p12 }
  0x35   : > { %1476 = shalt.err (!%p1473_p5)
}
  0x36   : > { %1346 = dma.hbm_to_vmem [thread:$0]  (!%p1619_p6), %s1841_s5, 16, %s1623_s28, [#allocation5]  }
  0x37   : > { %s1477_s15 = scalar_lea.hbm %s1845_s9, 16 }
  0x38   : > { %p1478_p7 = scmp.ne.s32.totalorder %s1845_s9, %s1477_s15  ;;  %p1484_p3 = scmp.lt.u32.totalorder %s1477_s15, %s1845_s9 }
  0x3a   : > { %p1480_p9 = pnand %p1478_p7, %p1635_p8 }
  0x3c   : > { %p1481_p2 = pneg %p1480_p9 }
  0x3e   : > { %p1486_p4 = pnand %p1484_p3, %p1481_p2 }
  0x40   : > { %1489 = shalt.err (!%p1486_p4)
}
  0x41   : > { %s1490_s28 = scalar_lea.vmem %s1625_s30, 16  ;;  %s1497_s21 = scalar_lea.vmem %s1625_s30, 32 }
  0x42   : > { %p1491_p10 = scmp.ne.s32.totalorder %s1625_s30, %s1490_s28  ;;  %p1498_p13 = scmp.lt.s32.totalorder %s1625_s30, %s1625_s30 }
  0x43   : > { %p1499_p0 = scmp.lt.s32.totalorder %s1497_s21, %s1490_s28 }
  0x44   : > { %p1493_p11 = pnand %p1491_p10, %p1635_p8 }
  0x45   : > { %p1500_p1 = por %p1499_p0, %p1498_p13 }
  0x46   : > { %p1494_p12 = pneg %p1493_p11 }
  0x48   : > { %p1501_p5 = pnand %p1500_p1, %p1494_p12 }
  0x4a   : > { %1504 = shalt.err (!%p1501_p5)
}
  0x4b   : > { %1352 = dma.hbm_to_vmem [thread:$0]  (!%p1619_p6), %s1845_s9, 16, %s1625_s30, [#allocation7]  }
  0x4c   : > { %p1854_p7 = scmp.ne.s32.totalorder %s1851_s11, 0 }
  0x4d   : > { %p1855_p8 = scmp.eq.s32.totalorder (!%p1854_p7), %s1605_s24, 0 }
  0x4e   : > { %400 = sbr.rel (%p1854_p7) target bundleno = 1385 (0x569), region = 68 }
  0x55   : > { %1510 = dma.done.wait (%p1855_p8), [#allocation5], 16   ;;  %p1856_p9 = pmov %p1855_p8 }
  0x56   : > { %p1857_p2 = pmov %p1855_p8 }
  0x57   : > { %1512 = vsyncadd (%p1856_p9), [#allocation5], 4294967280 }
  0x58   : > { %1514 = dma.done.wait (%p1857_p2), [#allocation7], 32   ;;  %p1858_p3 = pmov %p1857_p2 }
  0x59   : > { %s1162_s13 = sshll.u32 %s1605_s24, 2  ;;  %p1859_p6 = scmp.ne.s32.totalorder %s1605_s24, 0 }
  0x5a   : > { %1516 = vsyncadd (%p1858_p3), [#allocation7], 4294967264  ;;  %p451_p4 = scmp.lt.s32.totalorder %s1162_s13, 11  ;;  %v1524_v0 = vmov (!%p1859_p6), 0.0  }
  0x5b   : > { %466 = sbr.rel (%p1859_p6) target bundleno = 98 (0x62), region = 84  ;;  %467 = vst [vmem:[#allocation2] sm:$0xff] (!%p1859_p6), %v1524_v0 }
  0x5c   : > { %s1861_s13 = smov (!%p451_p4, %s1162_s13), 11 }
  0x5d   : > { %s1163_s30 = sshll.u32 %s1861_s13, 2  ;;  %s1165_s19 = sshll.u32 %s1861_s13, 3 }
  0x5e   : > { %s454_s27 = scalar_lea.vmem %s1836_s0, %s1163_s30  ;;  %s460_s15 = scalar_lea.vmem %s1837_s1, %s1165_s19 }
  0x62 PF: > { %v472_v1 = vld [vmem:[%s1838_s2] sm:$0xf]  ;;  %vm497_vm0 = vcmask 1043456   ;;  %v1525_v4 = vmov 0   ;;  %vm490_vm1 = vcmask 64512   ;;  %v1380_v6 = vld [vmem:[%s454_s27 + $0x8] sm:$0xff]   ;;  %v582_v11 = vlaneseq }
  0x63   : > { %v578_v2 = vld [vmem:[%s460_s15] sm:$0xff]  ;;  %1377 = vset.pattern.permute.xlu0 %v1525_v4  ;;  %1330 = vmatprep.subr.msk.bf16.mxu0 %vm497_vm0, %v472_v1  ;;  %v499_v5 = vsel %vm497_vm0, %v472_v1, 0  ;;  %v580_v7 = vld [vmem:[%s460_s15 + $0x10] sm:$0xff]  ;;  %v579_v8 = vld [vmem:[%s460_s15 + $0x8] sm:$0xff]  ;;  %v1526_v10 = vmov 0.0|0.0   ;;  %vm1527_vm2 = vmmov 0  }
  0x64   : > { %v1379_v3 = vld [vmem:[%s454_s27] sm:$0xff]   ;;  %585 = vperm.xlu0 %1377, %v578_v2   ;;  %1248 = vmatpush3.bf16.msra.mxu0 %v499_v5  ;;  %v581_v9 = vld [vmem:[%s460_s15 + $0x18] sm:$0xff]  ;;  %v583_v12 = vand.u32 127, %v582_v11  ;;  %v1528_v14 = vmov 0.0   ;;  %vm641_vm7 = vcmask 261120   ;;  %p1181_p10 = scmp.ne.s32.totalorder %s1605_s24, 2 }
  0x65   : > { %1249 = vmatprep.mubr.msk.bf16.mxu0 %vm490_vm1, %v1379_v3  ;;  %1378 = vset.pattern.permute.xlu1 %v1525_v4  ;;  %v1167_v22 = vld [vmem:[%s1839_s3] ss:$0 sm:$0xff]  ;;  %v1529_v59 = vmov (!%p1181_p10), 0.0   ;;  %v1398_v60 = vld [vmem:[%s1840_s4 + $0x8] sm:$0xff] (!%p1181_p10)   ;;  %vm1530_vm8 = vmmov (!%p1181_p10), 0   ;;  %v1399_v61 = vld [vmem:[%s1840_s4 + $0x10] sm:$0xff] (!%p1181_p10)  }
  0x66   : > { %591 = vperm.xlu1 %1378, %v580_v7   ;;  %1324 = vmatprep.subr.bf16.mxu1 %v1526_v10  ;;  %v608_v54 = vld [vmem:[#allocation2] sm:$0xff]  ;;  %v1400_v63 = vld [vmem:[%s1840_s4 + $0x18] sm:$0xff] (!%p1181_p10)   ;;  %v1406_v0 = vld [vmem:[%s1842_s6 + $0x8] sm:$0xff] (!%p1181_p10)   ;;  %s1077_s16 = sld [smem:[#allocation3]] (!%p1181_p10) }
  0x67   : > { %1250 = vmatmul.mubr.msk.bf16.vlgmr.msra.gmra.mrb[0].mxu0 %vm490_vm1, %v1380_v6  ;;  %1261 = vmatprep.mubr.msk.f32.mxu1 %vm1527_vm2, %v1528_v14  ;;  %v1397_v58 = vld [vmem:[%s1840_s4] sm:$0xff] (!%p1181_p10)   ;;  %v1407_v2 = vld [vmem:[%s1842_s6 + $0x10] sm:$0xff] (!%p1181_p10)   ;;  %v1402_v3 = vld [vmem:[%s1840_s4 + $0x28] sm:$0xff] (!%p1181_p10)  }
  0x68   : > { %588 = vperm.xlu0 %1377, %v579_v8   ;;  %1264 = vmatprep.subr.bf16.mxu0 (!%p1181_p10), %v1529_v59  ;;  %v1405_v62 = vld [vmem:[%s1842_s6] sm:$0xff] (!%p1181_p10)   ;;  %v1408_v4 = vld [vmem:[%s1842_s6 + $0x18] sm:$0xff] (!%p1181_p10)   ;;  %v1403_v5 = vld [vmem:[%s1840_s4 + $0x30] sm:$0xff] (!%p1181_p10)  }
  0x69   : > { %1265 = vmatpush3.bf16.msra.mxu0 (!%p1181_p10), %v1397_v58  ;;  %1280 = vmatprep.mubr.msk.bf16.mxu0 (!%p1181_p10), %vm1530_vm8, %v1529_v59  ;;  %v1401_v1 = vld [vmem:[%s1840_s4 + $0x20] sm:$0xff] (!%p1181_p10)   ;;  %v1404_v7 = vld [vmem:[%s1840_s4 + $0x38] sm:$0xff] (!%p1181_p10)   ;;  %v1411_v11 = vld [vmem:[%s1842_s6 + $0x30] sm:$0xff] (!%p1181_p10)  }
  0x6a   : > { %594 = vperm.xlu1 %1378, %v581_v9   ;;  %1266 = vmatprep.subr.bf16.mxu0 (!%p1181_p10), %v1529_v59  ;;  %v1409_v6 = vld [vmem:[%s1842_s6 + $0x20] sm:$0xff] (!%p1181_p10)   ;;  %v1410_v9 = vld [vmem:[%s1842_s6 + $0x28] sm:$0xff] (!%p1181_p10)  }
  0x6d   : > { %1267 = vmatpush3.bf16.msra.mxu0 (!%p1181_p10), %v1398_v60 }
  0x6e   : > { %1268 = vmatprep.subr.bf16.mxu0 (!%p1181_p10), %v1529_v59 }
  0x71   : > { %1269 = vmatpush3.bf16.msra.mxu0 (!%p1181_p10), %v1399_v61 }
  0x72   : > { %1270 = vmatprep.subr.bf16.mxu0 (!%p1181_p10), %v1529_v59 }
  0x75   : > { %1271 = vmatpush3.bf16.msra.mxu0 (!%p1181_p10), %v1400_v63 }
  0x76   : > { %1272 = vmatprep.subr.bf16.mxu0 (!%p1181_p10), %v1529_v59 }
  0x79   : > { %1273 = vmatpush3.bf16.msra.mxu0 (!%p1181_p10), %v1401_v1 }
  0x7a   : > { %1274 = vmatprep.subr.bf16.mxu0 (!%p1181_p10), %v1529_v59 }
  0x7d   : > { %1275 = vmatpush3.bf16.msra.mxu0 (!%p1181_p10), %v1402_v3 }
  0x7e   : > { %1276 = vmatprep.subr.bf16.mxu0 (!%p1181_p10), %v1529_v59 }
  0x81   : > { %1277 = vmatpush3.bf16.msra.mxu0 (!%p1181_p10), %v1403_v5 }
  0x82   : > { %1278 = vmatprep.subr.bf16.mxu0 (!%p1181_p10), %v1529_v59 }
  0x85   : > { %1279 = vmatpush3.bf16.msra.mxu0 (!%p1181_p10), %v1404_v7 }
  0x86   : > { %1304 = vmatprep.subr.bf16.mxu0 (!%p1181_p10), %v1529_v59 }
  0xe3   : > { %v586_v13 = vpop.permute.xlu0 %585 }
  0xe4   : > { %vm596_vm3 = vcmp.eq.s32.totalorder %v583_v12, %v586_v13  ;;  %v1413_v13 = vld [vmem:[%s1844_s8] sm:$0xff] (!%p1181_p10)  }
  0xe5   : > { %v1176_v15 = vsel %vm596_vm3, 1.0, %v1528_v14  ;;  %v592_v16 = vpop.permute.xlu1 %591 }
  0xe6   : > { %609 = vxpose.xlu0.b32.start [1/4] (short) (narrow) %v1176_v15, 8  ;;  %vm598_vm4 = vcmp.eq.s32.totalorder %v583_v12, %v592_v16  ;;  %v1415_v15 = vld [vmem:[%s1844_s8 + $0x10] sm:$0xff] (!%p1181_p10)   ;;  %v1416_v16 = vld [vmem:[%s1844_s8 + $0x18] sm:$0xff] (!%p1181_p10)  }
  0xe7   : > { %v589_v17 = vpop.permute.xlu0 %588  ;;  %v1178_v19 = vsel %vm598_vm4, 1.0, %v1528_v14 }
  0xe8   : > { %vm597_vm5 = vcmp.eq.s32.totalorder %v583_v12, %v589_v17  ;;  %v1417_v17 = vld [vmem:[%s1844_s8 + $0x20] sm:$0xff] (!%p1181_p10)  }
  0xe9   : > { %v1177_v18 = vsel %vm597_vm5, 1.0, %v1528_v14  ;;  %v595_v20 = vpop.permute.xlu1 %594 }
  0xea   : > { %610 = vxpose.xlu0.b32.cont [2/4] (short) (narrow) %v1177_v18, 8  ;;  %vm599_vm6 = vcmp.eq.s32.totalorder %v583_v12, %v595_v20  ;;  %v1412_v12 = vld [vmem:[%s1842_s6 + $0x38] sm:$0xff] (!%p1181_p10)   ;;  %v1418_v18 = vld [vmem:[%s1844_s8 + $0x28] sm:$0xff] (!%p1181_p10)  }
  0xeb   : > { %v1179_v21 = vsel %vm599_vm6, 1.0, %v1528_v14  ;;  %v1414_v14 = vld [vmem:[%s1844_s8 + $0x8] sm:$0xff] (!%p1181_p10)  }
  0xee   : > { %611 = vxpose.xlu0.b32.cont [3/4] (short) (narrow) %v1178_v19, 8  ;;  %v1182_v19 = vld [vmem:[#allocation4] ss:$0 sm:$0xff] (!%p1181_p10) }
  0xf2   : > { %612 = vxpose.xlu0.b32.end [4/4] (short) (narrow) %v1179_v21, 8 }
 0x13a   : > { %v1251_v23 = vpop.f32.mrb[0].mxu0 }
 0x13b   : > { %v544_v24 = vadd.f32 %v1251_v23, %v1167_v22  ;;  %v535_v25 = vpop.f32.mrb[1].mxu0 }
 0x13c   : > { %v536_v26 = vadd.f32 %v1167_v22, %v535_v25  ;;  %v1252_v27 = vpop.f32.mrb[2].mxu0 }
 0x13d   : > { %v1174_v28 = vmul.f32 -1.442695, %v544_v24  ;;  %v547_v29 = vadd.f32 %v1252_v27, %v1167_v22  ;;  %v538_v30 = vpop.f32.mrb[3].mxu0 }
 0x13e   : > { %v1172_v31 = vmul.f32 -1.442695, %v536_v26  ;;  %v539_v32 = vadd.f32 %v1167_v22, %v538_v30  ;;  %v1191_v30 = vld [vmem:[#allocation6] ss:$0 sm:$0xff] (!%p1181_p10) }
 0x13f   : > { %1381 = vpow2.f32 %v1174_v28  ;;  %v1175_v33 = vmul.f32 -1.442695, %v547_v29  ;;  %v1419_v28 = vld [vmem:[%s1844_s8 + $0x30] sm:$0xff] (!%p1181_p10)  }
 0x140   : > { %1383 = vpow2.f32 %v1172_v31  ;;  %v1173_v34 = vmul.f32 -1.442695, %v539_v32 }
 0x141   : > { %1385 = vpow2.f32 %v1175_v33 }
 0x142   : > { %1387 = vpow2.f32 %v1173_v34 }
 0x149   : > { %v1382_v35 = vpop.eup %1381 }
 0x14a   : > { %v1384_v36 = vpop.eup %1383  ;;  %v564_v37 = vadd.f32 1.0, %v1382_v35 }
 0x14b   : > { %v1386_v38 = vpop.eup %1385  ;;  %v562_v39 = vadd.f32 1.0, %v1384_v36 }
 0x14c   : > { %v1388_v40 = vpop.eup %1387  ;;  %1389 = vrcp.f32 %v564_v37  ;;  %v565_v41 = vadd.f32 1.0, %v1386_v38 }
 0x14d   : > { %1391 = vrcp.f32 %v562_v39  ;;  %v563_v42 = vadd.f32 1.0, %v1388_v40  ;;  %v1200_v39 = vld [vmem:[#allocation8] ss:$0 sm:$0xff] (!%p1181_p10) }
 0x14e   : > { %1393 = vrcp.f32 %v565_v41 }
 0x14f   : > { %1395 = vrcp.f32 %v563_v42 }
 0x156   : > { %v1390_v43 = vpop.eup %1389 }
 0x157   : > { %v1392_v44 = vpop.eup %1391  ;;  %v576_v47 = vmul.f32 %v1390_v43, %v544_v24 }
 0x158   : > { %v1394_v45 = vpop.eup %1393  ;;  %v574_v49 = vmul.f32 %v1392_v44, %v536_v26 }
 0x159   : > { %v1396_v46 = vpop.eup %1395  ;;  %v577_v48 = vmul.f32 %v1394_v45, %v547_v29  ;;  %v1420_v29 = vld [vmem:[%s1844_s8 + $0x38] sm:$0xff] (!%p1181_p10)  }
 0x15a   : > { %v575_v50 = vmul.f32 %v1396_v46, %v539_v32  ;;  %v1209_v46 = vld [vmem:[%s1846_s10] ss:$0 sm:$0xff] (!%p1181_p10) }
 0x15b   : > { %v1328_v51 = vpack.c.bf16 %v577_v48, %v576_v47 }
 0x15c   : > { %v1325_v52 = vpack.c.bf16 %v575_v50, %v574_v49  ;;  %v1078_v49 = vstv (!%p1181_p10), %s1077_s16 }
 0x15e   : > { %1326 = vmatpush3.bf16.msra.mxu1 %v1325_v52 }
 0x15f   : > { %1327 = vmatprep.subr.bf16.mxu1 %v1526_v10 }
 0x162   : > { %1329 = vmatpush3.bf16.msra.mxu1 %v1328_v51 }
 0x163   : > { %1284 = vmatprep.subr.bf16.mxu1 (!%p1181_p10), %v1529_v59 }
 0x166   : > { %v625_v53 = vpop.trf.xlu0 }
 0x167   : > { %1262 = vmatmul.mubr.msk.f32.vlgmr.msra.gmra.mrb[0].mxu1 %vm641_vm7, %v625_v53 }
 0x168   : > { %1300 = vmatprep.mubr.msk.bf16.mxu1 (!%p1181_p10), %vm1530_vm8, %v1529_v59  ;;  %1285 = vmatpush3.bf16.msra.mxu1 (!%p1181_p10), %v1405_v62 }
 0x169   : > { %1286 = vmatprep.subr.bf16.mxu1 (!%p1181_p10), %v1529_v59 }
 0x16c   : > { %1287 = vmatpush3.bf16.msra.mxu1 (!%p1181_p10), %v1406_v0 }
 0x16d   : > { %1288 = vmatprep.subr.bf16.mxu1 (!%p1181_p10), %v1529_v59 }
 0x170   : > { %1289 = vmatpush3.bf16.msra.mxu1 (!%p1181_p10), %v1407_v2 }
 0x171   : > { %1290 = vmatprep.subr.bf16.mxu1 (!%p1181_p10), %v1529_v59 }
 0x174   : > { %1291 = vmatpush3.bf16.msra.mxu1 (!%p1181_p10), %v1408_v4 }
 0x175   : > { %1292 = vmatprep.subr.bf16.mxu1 (!%p1181_p10), %v1529_v59 }
 0x178   : > { %1293 = vmatpush3.bf16.msra.mxu1 (!%p1181_p10), %v1409_v6 }
 0x179   : > { %1294 = vmatprep.subr.bf16.mxu1 (!%p1181_p10), %v1529_v59 }
 0x17c   : > { %1295 = vmatpush3.bf16.msra.mxu1 (!%p1181_p10), %v1410_v9 }
 0x17d   : > { %1296 = vmatprep.subr.bf16.mxu1 (!%p1181_p10), %v1529_v59 }
 0x180   : > { %1297 = vmatpush3.bf16.msra.mxu1 (!%p1181_p10), %v1411_v11 }
 0x181   : > { %1298 = vmatprep.subr.bf16.mxu1 (!%p1181_p10), %v1529_v59 }
 0x184   : > { %1299 = vmatpush3.bf16.msra.mxu1 (!%p1181_p10), %v1412_v12 }
 0x237   : > { %720 = sbr.rel (%p1181_p10) target bundleno = 1385 (0x569), region = 88 }
 0x23a   : > { %v711_v55 = vpop.f32.mrb[0].mxu1 }
 0x23b   : > { %v715_v56 = vadd.f32 %v711_v55, %v608_v54  ;;  %v1263_v57 = vpop.f32.mrb[1].mxu1 }
 0x23d   : > { %716 = vst [vmem:[#allocation2] sm:$0xff] %v715_v56 }
 0x244   : > { %v721_v8 = vld [vmem:[#allocation2] sm:$0xff] }
 0x245   : > { %v722_v10 = vpack.c.bf16 %v721_v8, %v721_v8 }
 0x247   : > { %1281 = vmatmul.mubr.bf16.vlgmr.msra.gmra.mrb[0].mxu0 %v722_v10 }
 0x248   : > { %1320 = vmatprep.mubr.msk.bf16.mxu0 %vm1530_vm8, %v1529_v59  ;;  %1305 = vmatpush3.bf16.msra.mxu0 %v1413_v13 }
 0x249   : > { %1306 = vmatprep.subr.bf16.mxu0 %v1529_v59 }
 0x24c   : > { %1307 = vmatpush3.bf16.msra.mxu0 %v1414_v14 }
 0x24d   : > { %1308 = vmatprep.subr.bf16.mxu0 %v1529_v59 }
 0x250   : > { %1309 = vmatpush3.bf16.msra.mxu0 %v1415_v15 }
 0x251   : > { %1310 = vmatprep.subr.bf16.mxu0 %v1529_v59 }
 0x254   : > { %1311 = vmatpush3.bf16.msra.mxu0 %v1416_v16 }
 0x255   : > { %1312 = vmatprep.subr.bf16.mxu0 %v1529_v59 }
 0x258   : > { %1313 = vmatpush3.bf16.msra.mxu0 %v1417_v17 }
 0x259   : > { %1314 = vmatprep.subr.bf16.mxu0 %v1529_v59 }
 0x25c   : > { %1315 = vmatpush3.bf16.msra.mxu0 %v1418_v18 }
 0x25d   : > { %1316 = vmatprep.subr.bf16.mxu0 %v1529_v59 }
 0x260   : > { %1317 = vmatpush3.bf16.msra.mxu0 %v1419_v28 }
 0x261   : > { %1318 = vmatprep.subr.bf16.mxu0 %v1529_v59 }
 0x264   : > { %1319 = vmatpush3.bf16.msra.mxu0 %v1420_v29 }
 0x31a   : > { %v828_v20 = vpop.f32.mrb[0].mxu0 }
 0x31b   : > { %v829_v21 = vadd.f32 %v1182_v19, %v828_v20  ;;  %v1282_v22 = vpop.f32.mrb[1].mxu0 }
 0x31c   : > { %v831_v23 = vpop.f32.mrb[2].mxu0 }
 0x31d   : > { %vm834_vm9 = vcmp.gt.f32.partialorder %v829_v21, 0.0  ;;  %v835_v24 = vmul.f32 0.01, %v829_v21  ;;  %v1283_v25 = vpop.f32.mrb[3].mxu0 }
 0x31f   : > { %v836_v26 = vsel %vm834_vm9, %v829_v21, %v835_v24 }
 0x320   : > { %v837_v27 = vpack.c.bf16 %v836_v26, %v836_v26 }
 0x322   : > { %1301 = vmatmul.mubr.bf16.vlgmr.msra.gmra.mrb[0].mxu1 %v837_v27 }
 0x3f5   : > { %v943_v31 = vpop.f32.mrb[0].mxu1 }
 0x3f6   : > { %v944_v32 = vadd.f32 %v1191_v30, %v943_v31  ;;  %v1302_v33 = vpop.f32.mrb[1].mxu1 }
 0x3f7   : > { %v946_v34 = vpop.f32.mrb[2].mxu1 }
 0x3f8   : > { %vm949_vm10 = vcmp.gt.f32.partialorder %v944_v32, 0.0  ;;  %v950_v35 = vmul.f32 0.01, %v944_v32  ;;  %v1303_v36 = vpop.f32.mrb[3].mxu1 }
 0x3fa   : > { %v951_v37 = vsel %vm949_vm10, %v944_v32, %v950_v35 }
 0x3fb   : > { %v952_v38 = vpack.c.bf16 %v951_v37, %v951_v37 }
 0x3fd   : > { %1321 = vmatmul.mubr.bf16.vlgmr.msra.gmra.mrb[4].mxu0 %v952_v38 }
 0x4d0   : > { %v1058_v40 = vpop.f32.mrb[4].mxu0 }
 0x4d1   : > { %v1059_v41 = vadd.f32 %v1200_v39, %v1058_v40  ;;  %v1322_v42 = vpop.f32.mrb[5].mxu0 }
 0x4d2   : > { %v1061_v43 = vpop.f32.mrb[6].mxu0 }
 0x4d3   : > { %v1065_v44 = vmul.f32 0.01, %v1059_v41  ;;  %v1323_v45 = vpop.f32.mrb[7].mxu0  ;;  %vm1064_vm11 = vcmp.gt.f32.partialorder %v1059_v41, 0.0 }
 0x4d5   : > { %v1066_v47 = vsel %vm1064_vm11, %v1059_v41, %v1065_v44 }
 0x4d6   : > { %v1074_v48 = vmul.f32 %v1209_v46, %v1066_v47 }
 0x4d8   : > { %1075 = vadd.xlane.f32.xlu0 %v1074_v48 }
 0x565   : > { %v1076_v50 = vpop.xlane.xlu0 %1075 }
 0x566   : > { %v1079_v51 = vadd.f32 %v1078_v49, %v1076_v50 }
 0x568   : > { %1080 = vst [vmem:[%s1848_s12] sm:$0xff] %v1079_v51 }
 0x569 PF: > { %s25_s23 = sadd.s32 1, %s1519_s23  }
 0x56a   : > { %p22_p11 = scmp.ge.s32.totalorder %s25_s23, 5  }
 0x56c   :  { %24 = sbr.rel (!%p22_p11) target bundleno = 4 (0x4), region = 118 }
 0x573   :  { %1092 = vsyncpa [#allocation5], 1 }
 0x574   :  { %1094 = vsyncpa [#allocation5 + $0x1], 1 }
 0x575   :  { %1095 = vsyncpa [#allocation7], 1 }

</bundles_post_ra>
